<compile_context>
chip_gen: v7x
topology: tpu7x:2x2x1
jax: 0.10.0
libtpu: 0.0.40
codegen_flags: <defaults>
</compile_context>

<pallas_src>
import functools

import jax
import jax.numpy as jnp
from jax.experimental import pallas as pl
from jax.experimental.pallas import tpu as pltpu


def autoencoder_kernel(x_ref, w1_ref, b1_ref, w2_ref, b2_ref, w3_ref, b3_ref, o_ref):
    """Fused forward: downblock applied twice (matches the PyTorch forward)."""
    # Hoist parameter loads once; reused across both downblock applications.
    w1 = w1_ref[...]          # bf16 (32, 128)
    w2 = w2_ref[...]          # bf16 (128, 64)
    w3 = w3_ref[...]          # bf16 (64, 32)
    b1 = b1_ref[...]          # f32  (1, 128)
    b2 = b2_ref[...]          # f32  (1, 64)
    b3 = b3_ref[...]          # f32  (1, 32)

    def downblock(h_bf16):
        h = jnp.dot(h_bf16, w1, preferred_element_type=jnp.float32) + b1
        h = jnp.maximum(h, 0.0).astype(jnp.bfloat16)
        h = jnp.dot(h, w2, preferred_element_type=jnp.float32) + b2
        h = jnp.maximum(h, 0.0).astype(jnp.bfloat16)
        h = jnp.dot(h, w3, preferred_element_type=jnp.float32) + b3
        return jnp.maximum(h, 0.0)               # f32 (tile_b, 32)

    x = x_ref[...].astype(jnp.bfloat16)
    latent = downblock(x)                         # latent_vector = downblock(input_data)
    out = downblock(latent.astype(jnp.bfloat16))  # output_data   = downblock(latent_vector)
    o_ref[...] = out.astype(o_ref.dtype)


def _round_up(n, m):
    return ((n + m - 1) // m) * m


@functools.partial(jax.jit, static_argnames=("tile_b",))
def auto_encoder_forward(x, params, *, tile_b=1024):
    """x: (B, 32) float32. params: dict of pre-transposed weights / biases.

    Batch is zero-padded to a multiple of the (clamped) tile so any B works
    while keeping a large, MXU-friendly M tile; padded rows are discarded.
    """
    B, F = x.shape
    assert F == 32, "forward() only type-checks when input_size == 32"

    # Clamp the tile to the (8-aligned) batch so tiny batches still compile.
    tile_b = max(8, min(tile_b, _round_up(B, 8)))
    B_pad = _round_up(B, tile_b)
    if B_pad != B:
        x = jnp.pad(x, ((0, B_pad - B), (0, 0)))

    # Weights in bf16 (MXU-native); biases in f32 (added to the f32 accumulator).
    w1 = params["w1"].astype(jnp.bfloat16)   # (32, 128)
    w2 = params["w2"].astype(jnp.bfloat16)   # (128, 64)
    w3 = params["w3"].astype(jnp.bfloat16)   # (64, 32)
    b1 = params["b1"].astype(jnp.float32)    # (1, 128)
    b2 = params["b2"].astype(jnp.float32)    # (1, 64)
    b3 = params["b3"].astype(jnp.float32)    # (1, 32)

    grid = (B_pad // tile_b,)

    def full(shape):
        # Whole (tiny) parameter array; constant index_map -> VMEM-resident.
        return pl.BlockSpec(shape, lambda i: (0, 0))

    layer_macs = 32 * 128 + 128 * 64 + 64 * 32
    cost = pl.CostEstimate(
        flops=2 * B_pad * layer_macs * 2,          # two downblock passes
        transcendentals=0,
        bytes_accessed=(B_pad * 32 * 4 * 2         # x in + out (f32)
                        + (w1.size + w2.size + w3.size) * 2
                        + (b1.size + b2.size + b3.size) * 4),
    )

    out = pl.pallas_call(
        autoencoder_kernel,
        out_shape=jax.ShapeDtypeStruct((B_pad, 32), x.dtype),
        grid_spec=pltpu.PrefetchScalarGridSpec(
            num_scalar_prefetch=0,
            grid=grid,
            in_specs=[
                pl.BlockSpec((tile_b, 32), lambda i: (i, 0)),   # x tile
                full(w1.shape), full(b1.shape),
                full(w2.shape), full(b2.shape),
                full(w3.shape), full(b3.shape),
            ],
            out_specs=pl.BlockSpec((tile_b, 32), lambda i: (i, 0)),
        ),
        compiler_params=pltpu.CompilerParams(
            dimension_semantics=("parallel",),          # megacore-shardable batch axis
            vmem_limit_bytes=32 << 20,                  # footprint ~1-2 MiB; ample headroom
        ),
        cost_estimate=cost,
    )(x, w1, b1, w2, b2, w3, b3)

    return out[:B]


def init_params(key, input_size=32):
    """Deterministic init matching PyTorch nn.Linear shapes.
    PyTorch stores W as (out, in); we transpose to (in, out) for x @ W."""
    dims = [(input_size, 128), (128, 64), (64, 32)]
    params = {}
    for idx, (fan_in, fan_out) in enumerate(dims, start=1):
        key, kw, kb = jax.random.split(key, 3)
        bound = 1.0 / jnp.sqrt(fan_in)
        w = jax.random.uniform(kw, (fan_out, fan_in), jnp.float32, -bound, bound).T
        b = jax.random.uniform(kb, (1, fan_out), jnp.float32, -bound, bound)
        params[f"w{idx}"] = w
        params[f"b{idx}"] = b
    # NOTE: upblock parameters exist in __init__ but are unused in forward();
    # they never touch the compute path, so we do not allocate them.
    return params


def reference_forward(x, params):
    """Pure-JAX f32 reference (matches the PyTorch forward)."""
    def downblock(h):
        h = jnp.maximum(h @ params["w1"] + params["b1"], 0.0)
        h = jnp.maximum(h @ params["w2"] + params["b2"], 0.0)
        h = jnp.maximum(h @ params["w3"] + params["b3"], 0.0)
        return h

    return downblock(downblock(x))


if __name__ == "__main__":
    key = jax.random.PRNGKey(0)
    k_params, k_x1, k_x2 = jax.random.split(key, 3)

    input_size = 32          # forward() feeds the 32-dim latent back into downblock
    params = init_params(k_params, input_size)

    # Small, non-multiple-of-8 batch: exercises the padding / tile-clamp path.
    x_small = jax.random.normal(k_x1, (12, input_size), jnp.float32)
    out_small = jax.block_until_ready(auto_encoder_forward(x_small, params))
    ref_small = reference_forward(x_small, params)
    assert out_small.shape == (12, input_size)
    assert jnp.allclose(out_small, ref_small, atol=3e-2, rtol=3e-2), \
        "mismatch vs reference (small batch)"

    # Larger batch: exercises multi-row tiling + batch padding with tile_b=512.
    x_med = jax.random.normal(k_x2, (600, input_size), jnp.float32)
    out_med = jax.block_until_ready(auto_encoder_forward(x_med, params, tile_b=512))
    ref_med = reference_forward(x_med, params)
    assert out_med.shape == (600, input_size)
    assert jnp.allclose(out_med, ref_med, atol=3e-2, rtol=3e-2), \
        "mismatch vs reference (multi-tile batch)"

    print("KERNEL_OK")
</pallas_src>

<mosaic_0001>
module attributes {stable_mosaic.version = 11 : i64} {
  func.func @autoencoder_kernel(%arg0: i32, %arg1: memref<16x32xf32, #tpu.memory_space<vmem>>, %arg2: memref<32x128xbf16, #tpu.memory_space<vmem>>, %arg3: memref<1x128xf32, #tpu.memory_space<vmem>>, %arg4: memref<128x64xbf16, #tpu.memory_space<vmem>>, %arg5: memref<1x64xf32, #tpu.memory_space<vmem>>, %arg6: memref<64x32xbf16, #tpu.memory_space<vmem>>, %arg7: memref<1x32xf32, #tpu.memory_space<vmem>>, %arg8: memref<16x32xf32, #tpu.memory_space<vmem>>) attributes {dimension_semantics = [#tpu.dimension_semantics<parallel>], iteration_bounds = array<i64: 1>, scalar_prefetch = 0 : i64, scratch_operands = 0 : i64, tpu.core_type = #tpu.core_type<tc>, window_params = [{transform_indices = @transform_0, window_bounds = array<i64: 16, 32>}, {pipeline_mode = #tpu.pipeline_mode<synchronous>, transform_indices = @transform_1, window_bounds = array<i64: 32, 128>}, {pipeline_mode = #tpu.pipeline_mode<synchronous>, transform_indices = @transform_2, window_bounds = array<i64: 1, 128>}, {pipeline_mode = #tpu.pipeline_mode<synchronous>, transform_indices = @transform_3, window_bounds = array<i64: 128, 64>}, {pipeline_mode = #tpu.pipeline_mode<synchronous>, transform_indices = @transform_4, window_bounds = array<i64: 1, 64>}, {pipeline_mode = #tpu.pipeline_mode<synchronous>, transform_indices = @transform_5, window_bounds = array<i64: 64, 32>}, {pipeline_mode = #tpu.pipeline_mode<synchronous>, transform_indices = @transform_6, window_bounds = array<i64: 1, 32>}, {transform_indices = @transform_7, window_bounds = array<i64: 16, 32>}]} {
    %c0 = arith.constant 0 : index
    %c0_0 = arith.constant 0 : index
    %0 = vector.load %arg2[%c0, %c0_0] : memref<32x128xbf16, #tpu.memory_space<vmem>>, vector<32x128xbf16>
    %c0_1 = arith.constant 0 : index
    %c0_2 = arith.constant 0 : index
    %1 = vector.load %arg4[%c0_1, %c0_2] : memref<128x64xbf16, #tpu.memory_space<vmem>>, vector<128x64xbf16>
    %c0_3 = arith.constant 0 : index
    %c0_4 = arith.constant 0 : index
    %2 = vector.load %arg6[%c0_3, %c0_4] : memref<64x32xbf16, #tpu.memory_space<vmem>>, vector<64x32xbf16>
    %c0_5 = arith.constant 0 : index
    %c0_6 = arith.constant 0 : index
    %3 = vector.load %arg3[%c0_5, %c0_6] : memref<1x128xf32, #tpu.memory_space<vmem>>, vector<1x128xf32>
    %c0_7 = arith.constant 0 : index
    %c0_8 = arith.constant 0 : index
    %4 = vector.load %arg5[%c0_7, %c0_8] : memref<1x64xf32, #tpu.memory_space<vmem>>, vector<1x64xf32>
    %c0_9 = arith.constant 0 : index
    %c0_10 = arith.constant 0 : index
    %5 = vector.load %arg7[%c0_9, %c0_10] : memref<1x32xf32, #tpu.memory_space<vmem>>, vector<1x32xf32>
    %c0_11 = arith.constant 0 : index
    %c0_12 = arith.constant 0 : index
    %6 = vector.load %arg1[%c0_11, %c0_12] : memref<16x32xf32, #tpu.memory_space<vmem>>, vector<16x32xf32>
    %7 = arith.truncf %6 : vector<16x32xf32> to vector<16x32xbf16>
    %cst = arith.constant dense<0.000000e+00> : vector<16x128xf32>
    %8 = tpu.matmul %7, %0, %cst {dimension_numbers = #tpu.dot_dimension_numbers<[1], [0], [0], [1], [0, 0, 1, 1], [], []>} : vector<16x32xbf16>, vector<32x128xbf16>, vector<16x128xf32> -> vector<16x128xf32>
    %9 = vector.broadcast %3 : vector<1x128xf32> to vector<16x128xf32>
    %10 = arith.addf %8, %9 : vector<16x128xf32>
    %cst_13 = arith.constant 0.000000e+00 : f32
    %11 = vector.broadcast %cst_13 : f32 to vector<16x128xf32>
    %12 = arith.maximumf %10, %11 : vector<16x128xf32>
    %13 = arith.truncf %12 : vector<16x128xf32> to vector<16x128xbf16>
    %cst_14 = arith.constant dense<0.000000e+00> : vector<16x64xf32>
    %14 = tpu.matmul %13, %1, %cst_14 {dimension_numbers = #tpu.dot_dimension_numbers<[1], [0], [0], [1], [0, 0, 1, 1], [], []>} : vector<16x128xbf16>, vector<128x64xbf16>, vector<16x64xf32> -> vector<16x64xf32>
    %15 = vector.broadcast %4 : vector<1x64xf32> to vector<16x64xf32>
    %16 = arith.addf %14, %15 : vector<16x64xf32>
    %cst_15 = arith.constant 0.000000e+00 : f32
    %17 = vector.broadcast %cst_15 : f32 to vector<16x64xf32>
    %18 = arith.maximumf %16, %17 : vector<16x64xf32>
    %19 = arith.truncf %18 : vector<16x64xf32> to vector<16x64xbf16>
    %cst_16 = arith.constant dense<0.000000e+00> : vector<16x32xf32>
    %20 = tpu.matmul %19, %2, %cst_16 {dimension_numbers = #tpu.dot_dimension_numbers<[1], [0], [0], [1], [0, 0, 1, 1], [], []>} : vector<16x64xbf16>, vector<64x32xbf16>, vector<16x32xf32> -> vector<16x32xf32>
    %21 = vector.broadcast %5 : vector<1x32xf32> to vector<16x32xf32>
    %22 = arith.addf %20, %21 : vector<16x32xf32>
    %cst_17 = arith.constant 0.000000e+00 : f32
    %23 = vector.broadcast %cst_17 : f32 to vector<16x32xf32>
    %24 = arith.maximumf %22, %23 : vector<16x32xf32>
    %25 = arith.truncf %24 : vector<16x32xf32> to vector<16x32xbf16>
    %cst_18 = arith.constant dense<0.000000e+00> : vector<16x128xf32>
    %26 = tpu.matmul %25, %0, %cst_18 {dimension_numbers = #tpu.dot_dimension_numbers<[1], [0], [0], [1], [0, 0, 1, 1], [], []>} : vector<16x32xbf16>, vector<32x128xbf16>, vector<16x128xf32> -> vector<16x128xf32>
    %27 = vector.broadcast %3 : vector<1x128xf32> to vector<16x128xf32>
    %28 = arith.addf %26, %27 : vector<16x128xf32>
    %cst_19 = arith.constant 0.000000e+00 : f32
    %29 = vector.broadcast %cst_19 : f32 to vector<16x128xf32>
    %30 = arith.maximumf %28, %29 : vector<16x128xf32>
    %31 = arith.truncf %30 : vector<16x128xf32> to vector<16x128xbf16>
    %cst_20 = arith.constant dense<0.000000e+00> : vector<16x64xf32>
    %32 = tpu.matmul %31, %1, %cst_20 {dimension_numbers = #tpu.dot_dimension_numbers<[1], [0], [0], [1], [0, 0, 1, 1], [], []>} : vector<16x128xbf16>, vector<128x64xbf16>, vector<16x64xf32> -> vector<16x64xf32>
    %33 = vector.broadcast %4 : vector<1x64xf32> to vector<16x64xf32>
    %34 = arith.addf %32, %33 : vector<16x64xf32>
    %cst_21 = arith.constant 0.000000e+00 : f32
    %35 = vector.broadcast %cst_21 : f32 to vector<16x64xf32>
    %36 = arith.maximumf %34, %35 : vector<16x64xf32>
    %37 = arith.truncf %36 : vector<16x64xf32> to vector<16x64xbf16>
    %cst_22 = arith.constant dense<0.000000e+00> : vector<16x32xf32>
    %38 = tpu.matmul %37, %2, %cst_22 {dimension_numbers = #tpu.dot_dimension_numbers<[1], [0], [0], [1], [0, 0, 1, 1], [], []>} : vector<16x64xbf16>, vector<64x32xbf16>, vector<16x32xf32> -> vector<16x32xf32>
    %39 = vector.broadcast %5 : vector<1x32xf32> to vector<16x32xf32>
    %40 = arith.addf %38, %39 : vector<16x32xf32>
    %cst_23 = arith.constant 0.000000e+00 : f32
    %41 = vector.broadcast %cst_23 : f32 to vector<16x32xf32>
    %42 = arith.maximumf %40, %41 : vector<16x32xf32>
    %c0_24 = arith.constant 0 : index
    %c0_25 = arith.constant 0 : index
    %43 = vector.load %arg8[%c0_24, %c0_25] : memref<16x32xf32, #tpu.memory_space<vmem>>, vector<16x32xf32>
    tpu.vector_store %arg8[%c0_24, %c0_25], %42 {strides = array<i32>} : memref<16x32xf32, #tpu.memory_space<vmem>>, vector<16x32xf32>,
    return
  }
  func.func @transform_0(%arg0: i32) -> (i32, i32) {
    %c0_i32 = arith.constant 0 : i32
    %c0_i32_0 = arith.constant 0 : i32
    return %arg0, %c0_i32 : i32, i32
  }
  func.func @transform_1(%arg0: i32) -> (i32, i32) {
    %c0_i32 = arith.constant 0 : i32
    %c0_i32_0 = arith.constant 0 : i32
    %c0_i32_1 = arith.constant 0 : i32
    return %c0_i32, %c0_i32_0 : i32, i32
  }
  func.func @transform_2(%arg0: i32) -> (i32, i32) {
    %c0_i32 = arith.constant 0 : i32
    %c0_i32_0 = arith.constant 0 : i32
    %c0_i32_1 = arith.constant 0 : i32
    return %c0_i32, %c0_i32_0 : i32, i32
  }
  func.func @transform_3(%arg0: i32) -> (i32, i32) {
    %c0_i32 = arith.constant 0 : i32
    %c0_i32_0 = arith.constant 0 : i32
    %c0_i32_1 = arith.constant 0 : i32
    return %c0_i32, %c0_i32_0 : i32, i32
  }
  func.func @transform_4(%arg0: i32) -> (i32, i32) {
    %c0_i32 = arith.constant 0 : i32
    %c0_i32_0 = arith.constant 0 : i32
    %c0_i32_1 = arith.constant 0 : i32
    return %c0_i32, %c0_i32_0 : i32, i32
  }
  func.func @transform_5(%arg0: i32) -> (i32, i32) {
    %c0_i32 = arith.constant 0 : i32
    %c0_i32_0 = arith.constant 0 : i32
    %c0_i32_1 = arith.constant 0 : i32
    return %c0_i32, %c0_i32_0 : i32, i32
  }
  func.func @transform_6(%arg0: i32) -> (i32, i32) {
    %c0_i32 = arith.constant 0 : i32
    %c0_i32_0 = arith.constant 0 : i32
    %c0_i32_1 = arith.constant 0 : i32
    return %c0_i32, %c0_i32_0 : i32, i32
  }
  func.func @transform_7(%arg0: i32) -> (i32, i32) {
    %c0_i32 = arith.constant 0 : i32
    %c0_i32_0 = arith.constant 0 : i32
    return %arg0, %c0_i32 : i32, i32
  }
}

</mosaic_0001>

<bundles_post_ra>
// kernel: auto_encoder_forward.1
= control target key start
LH: loop header
LB: loop body
LE: loop exit
PB: predicated region body
PF: predicated region fallthrough
CT: control target
= control target key end

     0   :  { %v637_v1 = vmov 0.0   ;;  %vm638_vm0 = vmmov 0   ;;  %vm80_vm1 = vcmask 261120   ;;  %s843_s0 = inlined_call_operand.vmem [shape: f32[16,32], index: 0, kind: input, shape index: {}]   ;;  %s844_s1 = inlined_call_operand.vmem [shape: bf16[32,128], index: 1, kind: input, shape index: {}]   ;;  %s845_s2 = inlined_call_operand.vmem [shape: f32[1,128], index: 2, kind: input, shape index: {}]   ;;  %s846_s3 = inlined_call_operand.vmem [shape: bf16[128,64], index: 3, kind: input, shape index: {}]   ;;  %s847_s4 = inlined_call_operand.vmem [shape: f32[1,64], index: 4, kind: input, shape index: {}]   ;;  %s848_s5 = inlined_call_operand.vmem [shape: bf16[64,32], index: 5, kind: input, shape index: {}]   ;;  %s849_s6 = inlined_call_operand.vmem [shape: f32[1,32], index: 6, kind: input, shape index: {}]   ;;  %s850_s7 = inlined_call_operand.hbm [shape: f32[16,32], index: 7, kind: output, shape index: {}]  }
   0x1   :  { %v685_v0 = vld [vmem:[%s844_s1] sm:$0xff]   ;;  %514 = vmatprep.subr.bf16.mxu1 %v637_v1  ;;  %v691_v2 = vld [vmem:[%s844_s1 + $0x8] sm:$0xff]   ;;  %542 = vmatprep.subr.bf16.mxu0 %v637_v1 }
   0x2   :  { %515 = vmatpush3.bf16.msra.mxu1 %v685_v0  ;;  %518 = vmatprep.mubr.msk.bf16.mxu1 %vm638_vm0, %v637_v1  ;;  %v59_v3 = vld [vmem:[%s843_s0] sm:$0xff]  ;;  %v60_v4 = vld [vmem:[%s843_s0 + $0x8] sm:$0xff] }
   0x3   :  { %516 = vmatprep.subr.bf16.mxu1 %v637_v1  ;;  %550 = vmatprep.mubr.msk.bf16.mxu0 %vm638_vm0, %v637_v1  ;;  %v61_v5 = vpack.c.bf16 %v60_v4, %v59_v3  ;;  %v710_v6 = vld [vmem:[%s846_s3] sm:$0xff]   ;;  %v716_v7 = vld [vmem:[%s846_s3 + $0x8] sm:$0xff]  }
   0x6   :  { %517 = vmatpush3.bf16.msra.mxu1 %v691_v2 }
   0x7   :  { %522 = vmatprep.subr.bf16.mxu1 %v637_v1 }
   0x9   :  { %519 = vmatmul.mubr.msk.bf16.vlgmr.msra.gmra.mrb[0].mxu1 %vm80_vm1, %v61_v5 }
   0xa   :  { %523 = vmatpush3.bf16.msra.mxu1 %v710_v6  ;;  %538 = vmatprep.mubr.msk.bf16.mxu1 %vm638_vm0, %v637_v1 }
   0xb   :  { %524 = vmatprep.subr.bf16.mxu1 %v637_v1 }
   0xc   :  { %12 = vsyncpa [#allocation3], 0  ;;  %v727_v8 = vld [vmem:[%s846_s3 + $0x10] sm:$0xff]   ;;  %v734_v9 = vld [vmem:[%s846_s3 + $0x18] sm:$0xff]   ;;  %vm256_vm2 = vcmask 523264  }
   0xd   :  { %v741_v10 = vld [vmem:[%s846_s3 + $0x20] sm:$0xff]   ;;  %v748_v11 = vld [vmem:[%s846_s3 + $0x28] sm:$0xff]   ;;  %v756_v12 = vld [vmem:[%s846_s3 + $0x30] sm:$0xff]  }
   0xe   :  { %525 = vmatpush3.bf16.msra.mxu1 %v716_v7  ;;  %v763_v13 = vld [vmem:[%s846_s3 + $0x38] sm:$0xff]   ;;  %v609_v14 = vld [vmem:[%s848_s5] sm:$0xff]   ;;  %v610_v15 = vld [vmem:[%s848_s5 + $0x8] sm:$0xff]  }
   0xf   :  { %526 = vmatprep.subr.bf16.mxu1 %v637_v1  ;;  %543 = vmatpush3.bf16.msra.mxu0 %v609_v14  ;;  %v778_v16 = vld [vmem:[%s845_s2] ss:$0 sm:$0xff]  ;;  %v611_v26 = vld [vmem:[%s848_s5 + $0x10] sm:$0xff]   ;;  %v612_v27 = vld [vmem:[%s848_s5 + $0x18] sm:$0xff]  }
  0x10   :  { %544 = vmatprep.subr.bf16.mxu0 %v637_v1  ;;  %v463_v28 = vld [vmem:[%s847_s4] ss:$0 sm:$0xff] }
  0x11   :  { %v472_v38 = vld [vmem:[%s849_s6] ss:$0 sm:$0xff]  ;;  %s639_s6 = smov [#allocation2]  }
  0x12   :  { %527 = vmatpush3.bf16.msra.mxu1 %v727_v8  ;;  %s448_s9 = sshll.u32 %s639_s6, 4  ;;  %s449_s9 = int_to_ptr.vmem [resolvable:$true] %s448_s9 }
  0x13   :  { %528 = vmatprep.subr.bf16.mxu1 %v637_v1  ;;  %545 = vmatpush3.bf16.msra.mxu0 %v610_v15  ;;  %s613_s10 = scalar_lea.vmem %s449_s9, 256  ;;  %p618_p1 = scmp.lt.s32.totalorder %s449_s9, %s449_s9 }
  0x14   :  { %546 = vmatprep.subr.bf16.mxu0 %v637_v1  ;;  %p614_p0 = scmp.ne.s32.totalorder %s449_s9, %s613_s10  ;;  %p619_p2 = scmp.lt.s32.totalorder %s613_s10, %s613_s10 }
  0x16   :  { %529 = vmatpush3.bf16.msra.mxu1 %v734_v9  ;;  %p620_p3 = por %p619_p2, %p618_p1 }
  0x17   :  { %530 = vmatprep.subr.bf16.mxu1 %v637_v1  ;;  %547 = vmatpush3.bf16.msra.mxu0 %v611_v26 }
  0x18   :  { %548 = vmatprep.subr.bf16.mxu0 %v637_v1  ;;  %p621_p4 = pnand %p620_p3, %p614_p0 }
  0x1a   :  { %531 = vmatpush3.bf16.msra.mxu1 %v741_v10 }
  0x1b   :  { %532 = vmatprep.subr.bf16.mxu1 %v637_v1  ;;  %549 = vmatpush3.bf16.msra.mxu0 %v612_v27 }
  0x1c   :  { %554 = vmatprep.subr.bf16.mxu0 %v637_v1 }
  0x1e   :  { %533 = vmatpush3.bf16.msra.mxu1 %v748_v11 }
  0x1f   :  { %534 = vmatprep.subr.bf16.mxu1 %v637_v1 }
  0x22   :  { %535 = vmatpush3.bf16.msra.mxu1 %v756_v12 }
  0x23   :  { %536 = vmatprep.subr.bf16.mxu1 %v637_v1 }
  0x26   :  { %537 = vmatpush3.bf16.msra.mxu1 %v763_v13 }
  0x27   :  { %582 = vmatprep.subr.bf16.mxu1 %v637_v1 }
  0xdc   :  { %v118_v17 = vpop.f32.mrb[0].mxu1 }
  0xdd   :  { %v119_v18 = vadd.f32 %v778_v16, %v118_v17  ;;  %v520_v19 = vpop.f32.mrb[1].mxu1 }
  0xde   :  { %v121_v20 = vpop.f32.mrb[2].mxu1 }
  0xdf   :  { %v122_v21 = vadd.f32 %v778_v16, %v121_v20  ;;  %v521_v22 = vpop.f32.mrb[3].mxu1  ;;  %v125_v23 = vmax.f32 %v119_v18, 0.0 }
  0xe1   :  { %v126_v24 = vmax.f32 %v122_v21, 0.0 }
  0xe3   :  { %v127_v25 = vpack.c.bf16 %v126_v24, %v125_v23 }
  0xe5   :  { %539 = vmatmul.mubr.bf16.vlgmr.msra.gmra.mrb[4].mxu1 %v127_v25 }
  0xe6   :  { %583 = vmatpush3.bf16.msra.mxu1 %v609_v14  ;;  %590 = vmatprep.mubr.msk.bf16.mxu1 %vm638_vm0, %v637_v1 }
  0xe7   :  { %584 = vmatprep.subr.bf16.mxu1 %v637_v1 }
  0xea   :  { %585 = vmatpush3.bf16.msra.mxu1 %v610_v15 }
  0xeb   :  { %586 = vmatprep.subr.bf16.mxu1 %v637_v1 }
  0xee   :  { %587 = vmatpush3.bf16.msra.mxu1 %v611_v26 }
  0xef   :  { %588 = vmatprep.subr.bf16.mxu1 %v637_v1 }
  0xf2   :  { %589 = vmatpush3.bf16.msra.mxu1 %v612_v27 }
 0x1b8   :  { %v216_v29 = vpop.f32.mrb[4].mxu1 }
 0x1b9   :  { %v217_v30 = vadd.f32 %v463_v28, %v216_v29  ;;  %v540_v31 = vpop.f32.mrb[5].mxu1 }
 0x1ba   :  { %v219_v32 = vpop.f32.mrb[6].mxu1 }
 0x1bb   :  { %v220_v33 = vadd.f32 %v463_v28, %v219_v32  ;;  %v541_v34 = vpop.f32.mrb[7].mxu1  ;;  %v223_v35 = vmax.f32 %v217_v30, 0.0 }
 0x1bd   :  { %v224_v36 = vmax.f32 %v220_v33, 0.0 }
 0x1bf   :  { %v225_v37 = vpack.c.bf16 %v224_v36, %v223_v35 }
 0x1c1   :  { %551 = vmatmul.mubr.msk.bf16.vlgmr.msra.gmra.mrb[0].mxu0 %vm256_vm2, %v225_v37 }
 0x1c2   :  { %555 = vmatpush3.bf16.msra.mxu0 %v685_v0  ;;  %558 = vmatprep.mubr.msk.bf16.mxu0 %vm638_vm0, %v637_v1 }
 0x1c3   :  { %556 = vmatprep.subr.bf16.mxu0 %v637_v1 }
 0x1c6   :  { %557 = vmatpush3.bf16.msra.mxu0 %v691_v2 }
 0x1c7   :  { %562 = vmatprep.subr.bf16.mxu0 %v637_v1 }
 0x294   :  { %v294_v39 = vpop.f32.mrb[0].mxu0 }
 0x295   :  { %v295_v40 = vadd.f32 %v472_v38, %v294_v39  ;;  %v552_v41 = vpop.f32.mrb[1].mxu0 }
 0x296   :  { %v297_v42 = vpop.f32.mrb[2].mxu0 }
 0x297   :  { %v298_v43 = vadd.f32 %v472_v38, %v297_v42  ;;  %v553_v44 = vpop.f32.mrb[3].mxu0  ;;  %v301_v45 = vmax.f32 %v295_v40, 0.0 }
 0x299   :  { %v302_v46 = vmax.f32 %v298_v43, 0.0 }
 0x29b   :  { %v303_v47 = vpack.c.bf16 %v302_v46, %v301_v45 }
 0x29d   :  { %559 = vmatmul.mubr.msk.bf16.vlgmr.msra.gmra.mrb[4].mxu0 %vm80_vm1, %v303_v47 }
 0x29e   :  { %563 = vmatpush3.bf16.msra.mxu0 %v710_v6  ;;  %578 = vmatprep.mubr.msk.bf16.mxu0 %vm638_vm0, %v637_v1 }
 0x29f   :  { %564 = vmatprep.subr.bf16.mxu0 %v637_v1 }
 0x2a2   :  { %565 = vmatpush3.bf16.msra.mxu0 %v716_v7 }
 0x2a3   :  { %566 = vmatprep.subr.bf16.mxu0 %v637_v1 }
 0x2a6   :  { %567 = vmatpush3.bf16.msra.mxu0 %v727_v8 }
 0x2a7   :  { %568 = vmatprep.subr.bf16.mxu0 %v637_v1 }
 0x2aa   :  { %569 = vmatpush3.bf16.msra.mxu0 %v734_v9 }
 0x2ab   :  { %570 = vmatprep.subr.bf16.mxu0 %v637_v1 }
 0x2ae   :  { %571 = vmatpush3.bf16.msra.mxu0 %v741_v10 }
 0x2af   :  { %572 = vmatprep.subr.bf16.mxu0 %v637_v1 }
 0x2b2   :  { %573 = vmatpush3.bf16.msra.mxu0 %v748_v11 }
 0x2b3   :  { %574 = vmatprep.subr.bf16.mxu0 %v637_v1 }
 0x2b6   :  { %575 = vmatpush3.bf16.msra.mxu0 %v756_v12 }
 0x2b7   :  { %576 = vmatprep.subr.bf16.mxu0 %v637_v1 }
 0x2ba   :  { %577 = vmatpush3.bf16.msra.mxu0 %v763_v13 }
 0x370   :  { %v341_v48 = vpop.f32.mrb[4].mxu0 }
 0x371   :  { %v342_v49 = vadd.f32 %v778_v16, %v341_v48  ;;  %v560_v50 = vpop.f32.mrb[5].mxu0 }
 0x372   :  { %v344_v51 = vpop.f32.mrb[6].mxu0 }
 0x373   :  { %v345_v52 = vadd.f32 %v778_v16, %v344_v51  ;;  %v561_v53 = vpop.f32.mrb[7].mxu0  ;;  %v348_v54 = vmax.f32 %v342_v49, 0.0 }
 0x375   :  { %v349_v55 = vmax.f32 %v345_v52, 0.0 }
 0x377   :  { %v350_v56 = vpack.c.bf16 %v349_v55, %v348_v54 }
 0x379   :  { %579 = vmatmul.mubr.bf16.vlgmr.msra.gmra.mrb[8].mxu0 %v350_v56 }
 0x44c   :  { %v385_v57 = vpop.f32.mrb[8].mxu0 }
 0x44d   :  { %v386_v58 = vadd.f32 %v463_v28, %v385_v57  ;;  %v580_v59 = vpop.f32.mrb[9].mxu0 }
 0x44e   :  { %v388_v60 = vpop.f32.mrb[10].mxu0 }
 0x44f   :  { %v389_v61 = vadd.f32 %v463_v28, %v388_v60  ;;  %v581_v62 = vpop.f32.mrb[11].mxu0  ;;  %v392_v63 = vmax.f32 %v386_v58, 0.0 }
 0x451   :  { %v393_v0 = vmax.f32 %v389_v61, 0.0 }
 0x453   :  { %v394_v1 = vpack.c.bf16 %v393_v0, %v392_v63 }
 0x455   :  { %591 = vmatmul.mubr.msk.bf16.vlgmr.msra.gmra.mrb[8].mxu1 %vm256_vm2, %v394_v1 }
 0x528   :  { %v432_v2 = vpop.f32.mrb[8].mxu1 }
 0x529   :  { %v433_v3 = vadd.f32 %v472_v38, %v432_v2  ;;  %v592_v4 = vpop.f32.mrb[9].mxu1 }
 0x52a   :  { %v435_v5 = vpop.f32.mrb[10].mxu1 }
 0x52b   :  { %v439_v6 = vmax.f32 %v433_v3, 0.0  ;;  %v436_v7 = vadd.f32 %v472_v38, %v435_v5  ;;  %v593_v8 = vpop.f32.mrb[11].mxu1 }
 0x52d   :  { %441 = vst.msk [vmem:[#allocation2] sm:$0xff] %vm80_vm1, %v439_v6  ;;  %v440_v9 = vmax.f32 %v436_v7, 0.0 }
 0x52f   :  { %442 = vst.msk [vmem:[#allocation2 + $0x8] sm:$0xff] %vm80_vm1, %v440_v9 }
 0x530   :  { %624 = shalt.err (!%p621_p4)
}
 0x531   :  { %s625_s12 = scalar_lea.hbm %s850_s7, 256 }
 0x532   :  { %p626_p5 = scmp.ne.s32.totalorder %s850_s7, %s625_s12  ;;  %p629_p6 = scmp.lt.u32.totalorder %s625_s12, %s850_s7 }
 0x534   :  { %p631_p7 = pnand %p629_p6, %p626_p5 }
 0x536   :  { %634 = shalt.err (!%p631_p7)
}
 0x537   :  { %s640_s17 = smov 128   ;;  %s641_s18 = smov 8  }
 0x538   :  { %454 = dma.vmem_to_hbm [thread:$0]  %s449_s9, 256, %s850_s7, [#allocation3], %s640_s17, %s640_s17, %s641_s18  }
 0x539   :  { %635 = dma.done.wait [#allocation3], 256  }
 0x53a   :  { %636 = vsyncadd [#allocation3], 4294967040 }
 0x53b   :  { %458 = vsyncpa [#allocation3], 1 }

</bundles_post_ra>
